<compile_context>
chip_gen: v7x
topology: tpu7x:2x2x1
jax: 0.10.0
libtpu: 0.0.40
codegen_flags: <defaults>
</compile_context>

<pallas_src>
import functools
import math
from math import log, pi

import numpy as np

import jax
import jax.numpy as jnp
from jax.experimental import pallas as pl
from jax.experimental.pallas import tpu as pltpu


def _axial_rope_kernel(coef_ref, sin_ref, cos_ref, *, th, h, w):
    """Fill one (th*w, dim) flat tile of the sin/cos axial-rotary tables.

    coef_ref: (1, dim) per-output-channel phase coefficient scale*pi
    (channel c -> scales[(c//2) % (dim//4)] * pi).  Whether a channel is
    driven by the row or column position is a channel mask (c < dim/2).
    """
    dim = sin_ref.shape[-1]
    half = dim // 2
    i0 = pl.program_id(0) * th  # first image row handled by this tile

    # linspace(-1, 1, n)[k] = k * 2/(n-1) - 1 ; torch.linspace(.., steps=1) == start.
    step_h = 2.0 / (h - 1) if h > 1 else 0.0
    step_w = 2.0 / (w - 1) if w > 1 else 0.0

    coef = coef_ref[...]  # (1, dim)

    # --- separable tables: one transcendental row per image row / column -----
    ti = jax.lax.broadcasted_iota(jnp.int32, (th, dim), 0).astype(jnp.float32)
    pos_h = (i0.astype(jnp.float32) + ti) * step_h - 1.0       # (th, dim)
    ph_h = pos_h * coef
    sin_h = jnp.sin(ph_h)
    cos_h = jnp.cos(ph_h)

    ji = jax.lax.broadcasted_iota(jnp.int32, (w, dim), 0).astype(jnp.float32)
    pos_w = ji * step_w - 1.0                                  # (w, dim)
    ph_w = pos_w * coef
    sin_w = jnp.sin(ph_w)
    cos_w = jnp.cos(ph_w)

    # --- assemble the (th, w, dim) tile and store it lane-dense as (th*w, dim)
    # First dim/2 channels broadcast the h-table along w; last dim/2 channels
    # tile the w-table along image rows.  Rows past `h` in a ragged final tile
    # compute finite garbage that the partial-block writeback discards.
    is_h = jax.lax.broadcasted_iota(jnp.int32, (1, 1, dim), 2) < half
    sin3 = jnp.where(is_h, sin_h[:, None, :], sin_w[None, :, :])   # (th, w, dim)
    cos3 = jnp.where(is_h, cos_h[:, None, :], cos_w[None, :, :])
    sin_ref[...] = sin3.reshape(th * w, dim).astype(sin_ref.dtype)
    cos_ref[...] = cos3.reshape(th * w, dim).astype(cos_ref.dtype)


def _num_tensorcores():
    """Best-effort TensorCore-per-chip count (v7x = 2); safe fallback = 1."""
    get_info = getattr(pltpu, "get_tpu_info", None)
    if get_info is None:
        return 1
    try:
        info = get_info()
    except Exception:
        return 1
    for name in ("num_cores", "core_count", "num_tensorcores",
                 "tensorcores_per_chip", "cores_per_chip"):
        v = getattr(info, name, None)
        if isinstance(v, int) and v > 0:
            return v
    return 1


def _pick_row_tile(h, w, dim, n_cores):
    """Image rows per grid step; th*w is a multiple of 8 unless th == h."""
    align = 8 // math.gcd(w, 8)          # smallest th making th*w % 8 == 0
    per_row = 2 * 2 * w * dim * 4        # two f32 outputs, double-buffered
    budget = 4 << 20                     # ~4 MiB of output blocks (v7x-safe)
    th = max(1, min(h, budget // max(per_row, 1)))
    if th >= h:
        th = h
        # Only multi-TC chips (v7x megacore) benefit from splitting a
        # single-block problem; single-TC chips keep grid=(1,) (no overhead).
        if n_cores > 1 and h > 1:
            split = -(-h // n_cores)                 # ceil(h / n_cores)
            split = -(-split // align) * align       # keep th*w % 8 == 0
            if split < h:
                th = split
    else:
        th = max(align, (th // align) * align)
    return th


@functools.partial(jax.jit, static_argnames=("h", "w", "out_dtype", "row_tile"))
def axial_rotary_pallas(coef, *, h, w, out_dtype=jnp.float32, row_tile=None):
    dim = coef.shape[-1]
    coef2 = coef.reshape(1, dim).astype(jnp.float32)

    if row_tile is None:
        th = _pick_row_tile(h, w, dim, _num_tensorcores())
    else:
        th = int(row_tile)
        assert th >= h or (th * w) % 8 == 0, "row_tile*w must be a multiple of 8"
    th = min(th, h)
    tr = th * w
    grid = (pl.cdiv(h, th),)

    kernel = functools.partial(_axial_rope_kernel, th=th, h=h, w=w)

    sin, cos = pl.pallas_call(
        kernel,
        out_shape=(
            jax.ShapeDtypeStruct((h * w, dim), out_dtype),
            jax.ShapeDtypeStruct((h * w, dim), out_dtype),
        ),
        grid_spec=pltpu.PrefetchScalarGridSpec(
            num_scalar_prefetch=0,
            grid=grid,
            in_specs=[
                pl.BlockSpec((1, dim), lambda i: (0, 0)),
            ],
            out_specs=[
                pl.BlockSpec((tr, dim), lambda i: (i, 0)),
                pl.BlockSpec((tr, dim), lambda i: (i, 0)),
            ],
        ),
        compiler_params=pltpu.CompilerParams(
            dimension_semantics=("parallel",),
            vmem_limit_bytes=24 << 20,
        ),
    )(coef2)

    # Final layout required by the reference: (1, h*w, dim) — pure metadata.
    return sin[None], cos[None]


class AxialRotaryEmbedding:
    """JAX/Pallas equivalent of DVC AxialRotaryEmbedding."""

    def __init__(self, dim, max_freq=10):
        assert dim % 4 == 0, "dim must be divisible by 4"
        self.dim = dim
        quarter = dim // 4

        # torch.logspace(0, log2(max_freq/2), dim//4, base=2)  (registered buffer)
        exps = np.linspace(0.0, log(max_freq / 2) / log(2), quarter)
        scales = np.power(2.0, exps).astype(np.float32)
        self.scales = jnp.asarray(scales)

        # Fold the output channel structure (concat of h/w halves + 2x
        # interleaved repeat) into a single per-channel coefficient
        # coef[c] = scales[(c//2) % quarter] * pi.  Whether a channel reads the
        # row or column position is decided by a channel mask in the kernel.
        k = (np.arange(dim) // 2) % quarter
        self._coef = jnp.asarray((scales[k] * pi).astype(np.float32)).reshape(1, dim)

    def __call__(self, h, w):
        # TODO(synk): torch forward's `device` arg has no JAX equivalent; dropped.
        return axial_rotary_pallas(self._coef, h=h, w=w)


if __name__ == "__main__":
    _ = jax.random.PRNGKey(0)  # module has no tensor inputs; kept for convention

    def reference(module, h, w):
        # Pure-JAX reference reproducing the PyTorch module exactly.
        dim = module.dim
        quarter = dim // 4
        scales = module.scales
        h_seq = jnp.linspace(-1.0, 1.0, h)[:, None] * scales[None, :] * pi   # (h, d/4)
        w_seq = jnp.linspace(-1.0, 1.0, w)[:, None] * scales[None, :] * pi   # (w, d/4)
        x_sinu = jnp.broadcast_to(h_seq[:, None, :], (h, w, quarter))
        y_sinu = jnp.broadcast_to(w_seq[None, :, :], (h, w, quarter))
        sin_r = jnp.concatenate([jnp.sin(x_sinu), jnp.sin(y_sinu)], -1).reshape(h * w, dim // 2)
        cos_r = jnp.concatenate([jnp.cos(x_sinu), jnp.cos(y_sinu)], -1).reshape(h * w, dim // 2)
        sin_r = jnp.repeat(sin_r, 2, axis=-1)[None]   # 'n d -> () n (d j)', j=2
        cos_r = jnp.repeat(cos_r, 2, axis=-1)[None]
        return sin_r, cos_r

    dim = 128        # dim maps to the 128-lane axis (lane-dense output)
    module = AxialRotaryEmbedding(dim, max_freq=10)

    # Case 1: aligned shape (single block on 1-TC chips, split on multi-TC).
    h, w = 8, 8
    sin, cos = module(h, w)
    sin = jax.block_until_ready(sin)
    cos = jax.block_until_ready(cos)
    sin_r, cos_r = reference(module, h, w)
    assert sin.shape == (1, h * w, dim) and cos.shape == (1, h * w, dim)
    assert jnp.allclose(sin, sin_r, atol=1e-4, rtol=1e-4), \
        float(jnp.max(jnp.abs(sin - sin_r)))
    assert jnp.allclose(cos, cos_r, atol=1e-4, rtol=1e-4), \
        float(jnp.max(jnp.abs(cos - cos_r)))

    # Case 2: non-divisible h with a forced small row tile — exercises the
    # ragged final output block (partial writeback) flagged in review.
    h, w = 7, 8
    sin, cos = axial_rotary_pallas(module._coef, h=h, w=w, row_tile=4)
    sin = jax.block_until_ready(sin)
    cos = jax.block_until_ready(cos)
    sin_r, cos_r = reference(module, h, w)
    assert sin.shape == (1, h * w, dim) and cos.shape == (1, h * w, dim)
    assert jnp.allclose(sin, sin_r, atol=1e-4, rtol=1e-4), \
        float(jnp.max(jnp.abs(sin - sin_r)))
    assert jnp.allclose(cos, cos_r, atol=1e-4, rtol=1e-4), \
        float(jnp.max(jnp.abs(cos - cos_r)))

    print("KERNEL_OK")
</pallas_src>

<mosaic_0001>
module attributes {stable_mosaic.version = 11 : i64} {
  func.func @_axial_rope_kernel(%arg0: i32, %arg1: memref<1x128xf32, #tpu.memory_space<vmem>>, %arg2: memref<64x128xf32, #tpu.memory_space<vmem>>, %arg3: memref<64x128xf32, #tpu.memory_space<vmem>>) attributes {dimension_semantics = [#tpu.dimension_semantics<parallel>], iteration_bounds = array<i64: 1>, scalar_prefetch = 0 : i64, scratch_operands = 0 : i64, tpu.core_type = #tpu.core_type<tc>, window_params = [{pipeline_mode = #tpu.pipeline_mode<synchronous>, transform_indices = @transform_0, window_bounds = array<i64: 1, 128>}, {transform_indices = @transform_1, window_bounds = array<i64: 64, 128>}, {transform_indices = @transform_2, window_bounds = array<i64: 64, 128>}]} {
    %c8_i32 = arith.constant 8 : i32
    %0 = arith.muli %arg0, %c8_i32 : i32
    %c0 = arith.constant 0 : index
    %c0_0 = arith.constant 0 : index
    %1 = vector.load %arg1[%c0, %c0_0] : memref<1x128xf32, #tpu.memory_space<vmem>>, vector<1x128xf32>
    %2 = tpu.iota {dimensions = array<i32: 0>} : vector<8x128xi32>
    %3 = arith.sitofp %2 : vector<8x128xi32> to vector<8x128xf32>
    %4 = arith.sitofp %0 : i32 to f32
    %5 = vector.broadcast %4 : f32 to vector<8x128xf32>
    %6 = arith.addf %5, %3 : vector<8x128xf32>
    %cst = arith.constant 0.285714298 : f32
    %7 = vector.broadcast %cst : f32 to vector<8x128xf32>
    %8 = arith.mulf %6, %7 : vector<8x128xf32>
    %cst_1 = arith.constant 1.000000e+00 : f32
    %9 = vector.broadcast %cst_1 : f32 to vector<8x128xf32>
    %10 = arith.subf %8, %9 : vector<8x128xf32>
    %11 = vector.broadcast %1 : vector<1x128xf32> to vector<8x128xf32>
    %12 = arith.mulf %10, %11 : vector<8x128xf32>
    %13 = math.sin %12 : vector<8x128xf32>
    %14 = math.cos %12 : vector<8x128xf32>
    %15 = tpu.iota {dimensions = array<i32: 0>} : vector<8x128xi32>
    %16 = arith.sitofp %15 : vector<8x128xi32> to vector<8x128xf32>
    %cst_2 = arith.constant 0.285714298 : f32
    %17 = vector.broadcast %cst_2 : f32 to vector<8x128xf32>
    %18 = arith.mulf %16, %17 : vector<8x128xf32>
    %cst_3 = arith.constant 1.000000e+00 : f32
    %19 = vector.broadcast %cst_3 : f32 to vector<8x128xf32>
    %20 = arith.subf %18, %19 : vector<8x128xf32>
    %21 = vector.broadcast %1 : vector<1x128xf32> to vector<8x128xf32>
    %22 = arith.mulf %20, %21 : vector<8x128xf32>
    %23 = math.sin %22 : vector<8x128xf32>
    %24 = math.cos %22 : vector<8x128xf32>
    %25 = tpu.iota {dimensions = array<i32: 2>} : vector<1x1x128xi32>
    %c64_i32 = arith.constant 64 : i32
    %26 = vector.broadcast %c64_i32 : i32 to vector<1x1x128xi32>
    %27 = arith.cmpi slt, %25, %26 : vector<1x1x128xi32>
    %28 = vector.shape_cast %13 : vector<8x128xf32> to vector<8x1x128xf32>
    %29 = vector.shape_cast %23 : vector<8x128xf32> to vector<1x8x128xf32>
    %30 = vector.shape_cast %27 : vector<1x1x128xi1> to vector<1x1x128xi1>
    %31 = vector.broadcast %30 : vector<1x1x128xi1> to vector<8x8x128xi1>
    %32 = vector.shape_cast %28 : vector<8x1x128xf32> to vector<8x1x128xf32>
    %33 = vector.broadcast %32 : vector<8x1x128xf32> to vector<8x8x128xf32>
    %34 = vector.shape_cast %29 : vector<1x8x128xf32> to vector<1x8x128xf32>
    %35 = vector.broadcast %34 : vector<1x8x128xf32> to vector<8x8x128xf32>
    %36 = arith.select %31, %33, %35 : vector<8x8x128xi1>, vector<8x8x128xf32>
    %37 = vector.shape_cast %14 : vector<8x128xf32> to vector<8x1x128xf32>
    %38 = vector.shape_cast %24 : vector<8x128xf32> to vector<1x8x128xf32>
    %39 = vector.shape_cast %27 : vector<1x1x128xi1> to vector<1x1x128xi1>
    %40 = vector.broadcast %39 : vector<1x1x128xi1> to vector<8x8x128xi1>
    %41 = vector.shape_cast %37 : vector<8x1x128xf32> to vector<8x1x128xf32>
    %42 = vector.broadcast %41 : vector<8x1x128xf32> to vector<8x8x128xf32>
    %43 = vector.shape_cast %38 : vector<1x8x128xf32> to vector<1x8x128xf32>
    %44 = vector.broadcast %43 : vector<1x8x128xf32> to vector<8x8x128xf32>
    %45 = arith.select %40, %42, %44 : vector<8x8x128xi1>, vector<8x8x128xf32>
    %46 = vector.shape_cast %36 : vector<8x8x128xf32> to vector<64x128xf32>
    %c0_4 = arith.constant 0 : index
    %c0_5 = arith.constant 0 : index
    %47 = vector.load %arg2[%c0_4, %c0_5] : memref<64x128xf32, #tpu.memory_space<vmem>>, vector<64x128xf32>
    tpu.vector_store %arg2[%c0_4, %c0_5], %46 {strides = array<i32>} : memref<64x128xf32, #tpu.memory_space<vmem>>, vector<64x128xf32>,
    %48 = vector.shape_cast %45 : vector<8x8x128xf32> to vector<64x128xf32>
    %c0_6 = arith.constant 0 : index
    %c0_7 = arith.constant 0 : index
    %49 = vector.load %arg3[%c0_6, %c0_7] : memref<64x128xf32, #tpu.memory_space<vmem>>, vector<64x128xf32>
    tpu.vector_store %arg3[%c0_6, %c0_7], %48 {strides = array<i32>} : memref<64x128xf32, #tpu.memory_space<vmem>>, vector<64x128xf32>,
    return
  }
  func.func @transform_0(%arg0: i32) -> (i32, i32) {
    %c0_i32 = arith.constant 0 : i32
    %c0_i32_0 = arith.constant 0 : i32
    %c0_i32_1 = arith.constant 0 : i32
    return %c0_i32, %c0_i32_0 : i32, i32
  }
  func.func @transform_1(%arg0: i32) -> (i32, i32) {
    %c0_i32 = arith.constant 0 : i32
    %c0_i32_0 = arith.constant 0 : i32
    return %arg0, %c0_i32 : i32, i32
  }
  func.func @transform_2(%arg0: i32) -> (i32, i32) {
    %c0_i32 = arith.constant 0 : i32
    %c0_i32_0 = arith.constant 0 : i32
    return %arg0, %c0_i32 : i32, i32
  }
}

</mosaic_0001>

<bundles_post_ra>
// kernel: axial_rotary_pallas.1
= control target key start
LH: loop header
LB: loop body
LE: loop exit
PB: predicated region body
PF: predicated region fallthrough
CT: control target
= control target key end

     0   :  { %8 = vsyncpa [#allocation3], 0  ;;  %s1009_s0 = inlined_call_operand.hbm [shape: f32[1,128], index: 0, kind: input, shape index: {}]   ;;  %s1010_s1 = inlined_call_operand.hbm [shape: f32[64,128], index: 1, kind: output, shape index: {0}]   ;;  %s1011_s2 = inlined_call_operand.hbm [shape: f32[64,128], index: 2, kind: output, shape index: {1}]  }
   0x1   :  { %9 = vsyncpa [#allocation4], 0 }
   0x2   :  { %10 = vsyncpa [#allocation7], 0  ;;  %s819_s9 = smov [#allocation2]   ;;  %s747_s13 = scalar_lea.hbm %s1009_s0, 16 }
   0x3   :  { %s17_s10 = sshll.u32 %s819_s9, 4  ;;  %p748_p0 = scmp.ne.s32.totalorder %s1009_s0, %s747_s13  ;;  %s18_s10 = int_to_ptr.vmem [resolvable:$true] %s17_s10 }
   0x4   :  { %p751_p1 = scmp.lt.u32.totalorder %s747_s13, %s1009_s0 }
   0x6   :  { %p753_p2 = pnand %p751_p1, %p748_p0 }
   0x8   :  { %756 = shalt.err (!%p753_p2)
}
   0x9   :  { %s757_s18 = scalar_lea.vmem %s18_s10, 16  ;;  %s761_s19 = scalar_lea.vmem %s18_s10, 32 }
   0xa   :  { %p758_p3 = scmp.ne.s32.totalorder %s18_s10, %s757_s18  ;;  %p762_p4 = scmp.lt.s32.totalorder %s18_s10, %s18_s10 }
   0xb   :  { %p763_p5 = scmp.lt.s32.totalorder %s761_s19, %s757_s18 }
   0xd   :  { %p764_p6 = por %p763_p5, %p762_p4 }
   0xf   :  { %p765_p7 = pnand %p764_p6, %p758_p3 }
  0x11   :  { %768 = shalt.err (!%p765_p7)
}
  0x12   :  { %20 = dma.hbm_to_vmem [thread:$0]  %s1009_s0, 16, %s18_s10, [#allocation3]  }
  0x13   :  { %813 = dma.done.wait [#allocation3], 16  }
  0x14   :  { %814 = vsyncadd [#allocation3], 4294967280  ;;  %v26_v0 = vlaneseq  ;;  %v709_v4 = vld [vmem:[#allocation2] ss:$0 sm:$0xff]  ;;  %v820_v18 = vmov 683565275  }
  0x15   :  { %v821_v20 = vmov 2475754826   ;;  %v822_v22 = vmov 2131351028   ;;  %v823_v24 = vmov 2102212464  }
  0x16   :  { %v859_v1 = vshrl.u32 %v26_v0, 7  ;;  %v824_v26 = vmov 920167782   ;;  %v825_v33 = vmov 1326507024   ;;  %s827_s0 = smov [#allocation5]  }
  0x17   :  { %s680_s22 = sshll.u32 %s827_s0, 4  ;;  %s681_s22 = int_to_ptr.vmem [resolvable:$true] %s680_s22 }
  0x18   :  { %v28_v2 = vcvt.s32.f32 %v859_v1  ;;  %s769_s23 = scalar_lea.vmem %s681_s22, 1024  ;;  %p774_p9 = scmp.lt.s32.totalorder %s681_s22, %s681_s22 }
  0x19   :  { %p770_p8 = scmp.ne.s32.totalorder %s681_s22, %s769_s23  ;;  %p775_p10 = scmp.lt.s32.totalorder %s769_s23, %s769_s23 }
  0x1a   :  { %v32_v3 = vmul.f32 0.2857143, %v28_v2 }
  0x1b   :  { %p776_p11 = por %p775_p10, %p774_p9 }
  0x1c   :  { %v708_v5 = vadd.f32 -1.0, %v32_v3 }
  0x1d   :  { %p777_p12 = pnand %p776_p11, %p770_p8 }
  0x1e   :  { %v862_v6 = vmul.f32 %v709_v4, %v708_v5 }
  0x20   :  { %v44_v7 = vand.u32 2139095040, %v862_v6  ;;  %v41_v9 = vand.u32 2147483647, %v862_v6  ;;  %vm43_vm7 = vcmp.lt.s32.totalorder %v862_v6, 0  ;;  %vm133_vm15 = vweird.f32 %v862_v6 }
  0x22   :  { %v45_v8 = vshrl.u32 %v44_v7, 23  ;;  %v48_v12 = vand.u32 8388607, %v41_v9  ;;  %vm42_vm8 = vcmp.le.f32.partialorder %v41_v9, 0.7853982 }
  0x24   :  { %v710_v10 = vadd.s32 4294967169, %v45_v8  ;;  %v49_v15 = vor.u32 8388608, %v48_v12 }
  0x26   :  { %v51_v11 = vadd.s32 1, %v710_v10  ;;  %v89_v35 = vshll.u32 %v49_v15, 8 }
  0x28   :  { %vm52_vm0 = vcmp.gt.s32.totalorder %v51_v11, 0 }
  0x29   :  { %v53_v13 = vsel %vm52_vm0, %v51_v11, 0 }
  0x2a   :  { %v55_v14 = vand.u32 31, %v53_v13  ;;  %v54_v16 = vshrl.u32 %v53_v13, 5 }
  0x2c   :  { %v56_v17 = vsub.s32 32, %v55_v14  ;;  %v58_v19 = vshll.u32 %v820_v18, %v55_v14  ;;  %v61_v21 = vshll.u32 %v821_v20, %v55_v14  ;;  %v64_v23 = vshll.u32 %v822_v22, %v55_v14 }
  0x2d   :  { %v67_v25 = vshll.u32 %v823_v24, %v55_v14  ;;  %v70_v27 = vshll.u32 %v824_v26, %v55_v14  ;;  %vm73_vm1 = vcmp.lt.s32.totalorder %v54_v16, 1  ;;  %vm76_vm2 = vcmp.lt.s32.totalorder %v54_v16, 4 }
  0x2e   :  { %v57_v28 = vshrl.u32 %v820_v18, %v56_v17  ;;  %v59_v29 = vshrl.u32 %v821_v20, %v56_v17  ;;  %v62_v30 = vshrl.u32 %v822_v22, %v56_v17  ;;  %v65_v31 = vshrl.u32 %v823_v24, %v56_v17 }
  0x2f   :  { %v68_v32 = vshrl.u32 %v824_v26, %v56_v17  ;;  %v71_v34 = vshrl.u32 %v825_v33, %v56_v17  ;;  %vm74_vm3 = vcmp.lt.s32.totalorder %v54_v16, 2  ;;  %vm75_vm4 = vcmp.lt.s32.totalorder %v54_v16, 3 }
  0x30   :  { %v60_v36 = vor.u32 %v59_v29, %v58_v19  ;;  %v63_v37 = vor.u32 %v62_v30, %v61_v21  ;;  %v66_v38 = vor.u32 %v65_v31, %v64_v23  ;;  %v826_v29 = vmov 1966171168  }
  0x31   :  { %v69_v39 = vor.u32 %v68_v32, %v67_v25  ;;  %v72_v40 = vor.u32 %v71_v34, %v70_v27  ;;  %v464_v30 = vunpack.c.l.s4 %v826_v29 }
  0x32   :  { %v77_v41 = vsel %vm73_vm1, %v57_v28, %v60_v36  ;;  %v78_v42 = vsel %vm76_vm2, %v66_v38, 2102212464  ;;  %v81_v43 = vsel %vm73_vm1, %v60_v36, %v63_v37  ;;  %v85_v44 = vsel %vm73_vm1, %v63_v37, %v66_v38 }
  0x33   :  { %v79_v45 = vsel %vm75_vm4, %v63_v37, %v78_v42  ;;  %v82_v46 = vsel %vm76_vm2, %v69_v39, 920167782  ;;  %v86_v47 = vsel %vm76_vm2, %v72_v40, 1326507024  ;;  %v465_v33 = vunpack.c.0.s8 %v464_v30 }
  0x34   :  { %v83_v48 = vsel %vm75_vm4, %v66_v38, %v82_v46  ;;  %v87_v49 = vsel %vm75_vm4, %v69_v39, %v86_v47  ;;  %v80_v50 = vsel %vm74_vm3, %v77_v41, %v79_v45  ;;  %v889_v45 = vand.u32 127, %v26_v0 }
  0x35   :  { %v84_v51 = vsel %vm74_vm3, %v81_v43, %v83_v48  ;;  %v88_v52 = vsel %vm74_vm3, %v85_v44, %v87_v49  ;;  %v96_v57 = vmul.u32 %v89_v35, %v80_v50  ;;  %v884_v38 = vsub.s32 %v465_v33, %v859_v1 }
  0x36   :  { %v868_v53 = vmul.u32.u64.low %v89_v35, %v88_v52  ;;  %v869_v54 = vmul.u32.u64.high %v89_v35, %v88_v52, %v868_v53  ;;  %v871_v55 = vmul.u32.u64.low %v89_v35, %v84_v51  ;;  %v872_v56 = vmul.u32.u64.high %v89_v35, %v84_v51, %v871_v55 }
  0x37   :  { %v892_v46 = vsub.s32 0, %v859_v1  ;;  %vm460_vm0 = vcmp.lt.s32.totalorder %v889_v45, 64 }
  0x38   :  { %vm98_vm5 = vc.u32 %v869_v54, %v871_v55  ;;  %v99_v58 = vadd.s32 1, %v872_v56  ;;  %v97_v8 = vadd.s32 %v871_v55, %v869_v54 }
  0x3a   :  { %v100_v59 = vsel %vm98_vm5, %v99_v58, %v872_v56 }
  0x3b   :  { %v101_v60 = vadd.s32 %v100_v59, %v96_v57 }
  0x3d   :  { %v102_v61 = vadd.s32 536870912, %v101_v60 }
  0x3f   :  { %v103_v62 = vshrl.u32 %v102_v61, 30 }
  0x41   :  { %v104_v63 = vshll.u32 %v103_v62, 30  ;;  %v127_v21 = vsub.s32 4, %v103_v62 }
  0x43   :  { %v105_v2 = vsub.s32 %v101_v60, %v104_v63  ;;  %v128_v24 = vsel %vm43_vm7, %v127_v21, %v103_v62 }
  0x44   :  { %v130_v27 = vsel %vm42_vm8, 0, %v128_v24 }
  0x45   :  { %v107_v3 = vsub.s32 0, %v105_v2  ;;  %v134_v28 = vadd.s32 3, %v130_v27  ;;  %v238_v32 = vand.u32 3, %v130_v27 }
  0x47   :  { %v711_v4 = vmin.u32 %v107_v3, %v105_v2  ;;  %v135_v31 = vand.u32 3, %v134_v28  ;;  %vm243_vm10 = vcmp.eq.s32.totalorder %v238_v32, 2  ;;  %vm240_vm12 = vcmp.eq.s32.totalorder %v238_v32, 0 }
  0x48   :  { %vm239_vm14 = vcmp.lt.s32.totalorder %v238_v32, 2 }
  0x49   :  { %v109_v5 = vclz %v711_v4  ;;  %vm140_vm9 = vcmp.eq.s32.totalorder %v135_v31, 2  ;;  %vm137_vm11 = vcmp.eq.s32.totalorder %v135_v31, 0  ;;  %vm136_vm13 = vcmp.lt.s32.totalorder %v135_v31, 2 }
  0x4b   :  { %v712_v7 = vadd.s32 4294967294, %v109_v5 }
  0x4d   :  { %vm713_vm6 = vcmp.lt.s32.totalorder %v712_v7, 0 }
  0x4e   :  { %v112_v10 = vsel %vm713_vm6, 0, %v712_v7 }
  0x4f   :  { %v113_v11 = vsub.s32 32, %v112_v10  ;;  %v114_v12 = vshll.u32 %v105_v2, %v112_v10  ;;  %v117_v13 = vsub.s32 4294967266, %v112_v10 }
  0x51   :  { %v115_v14 = vshrl.u32 %v97_v8, %v113_v11  ;;  %v118_v15 = vadd.s32 127, %v117_v13 }
  0x53   :  { %v116_v16 = vor.u32 %v115_v14, %v114_v12  ;;  %v119_v17 = vshll.u32 %v118_v15, 23 }
  0x55   :  { %v120_v18 = vor.u32 4788187, %v119_v17  ;;  %v123_v19 = vcvt.s32.f32 %v116_v16 }
  0x57   :  { %v121_v20 = vand.u32 2147483647, %v120_v18 }
  0x59   :  { %v124_v22 = vmul.f32 %v123_v19, %v121_v20 }
  0x5b   :  { %v125_v23 = vxor.u32 2147483648, %v124_v22 }
  0x5d   :  { %v126_v25 = vsel %vm43_vm7, %v125_v23, %v124_v22 }
  0x5e   :  { %v129_v26 = vsel %vm42_vm8, %v862_v6, %v126_v25 }
  0x5f   :  { %743 = vcosq.f32 %v129_v26 }
  0x60   :  { %745 = vsinq.f32 %v129_v26 }
  0x69   :  { %v744_v34 = vpop.eup %743 }
  0x6a   :  { %v746_v35 = vpop.eup %745  ;;  %v141_v9 = vxor.u32 2147483648, %v744_v34 }
  0x6b   :  { %v138_v36 = vxor.u32 2147483648, %v746_v35 }
  0x6c   :  { %v142_v37 = vsel %vm140_vm9, %v141_v9, %v746_v35  ;;  %v245_v39 = vsel %vm243_vm10, %v141_v9, %v746_v35 }
  0x6d   :  { %v139_v40 = vsel %vm137_vm11, %v744_v34, %v138_v36  ;;  %v242_v41 = vsel %vm240_vm12, %v744_v34, %v138_v36 }
  0x6e   :  { %v143_v42 = vsel %vm136_vm13, %v139_v40, %v142_v37  ;;  %v246_v43 = vsel %vm239_vm14, %v242_v41, %v245_v39 }
  0x6f   :  { %v886_v44 = vsel %vm133_vm15, nan, %v143_v42  ;;  %v894_v47 = vsel %vm133_vm15, nan, %v246_v43 }
  0x70   :  { %v469_v6 = vrot.slane %v886_v44, %v884_v38  ;;  %v462_v48 = vcombine.high %v886_v44, %v886_v44  ;;  %v569_v49 = vrot.slane %v894_v47, %v884_v38  ;;  %v562_v50 = vcombine.high %v894_v47, %v894_v47 }
  0x72   :  { %v485_v0 = vrot.slane %v469_v6, %v884_v38  ;;  %v477_v51 = vcombine.high %v469_v6, %v469_v6  ;;  %v476_v1 = vrot.slane %v462_v48, %v884_v38  ;;  %v585_v52 = vrot.slane %v569_v49, %v884_v38 }
  0x73   :  { %v577_v53 = vcombine.high %v569_v49, %v569_v49  ;;  %v576_v54 = vrot.slane %v562_v50, %v884_v38 }
  0x74   :  { %v516_v55 = vrot.slane %v485_v0, %v892_v46  ;;  %v499_v56 = vrot.slane %v477_v51, %v884_v38  ;;  %v507_v57 = vcombine.high %v485_v0, %v485_v0  ;;  %v492_v58 = vrot.slane %v476_v1, %v884_v38 }
  0x75   :  { %v478_v59 = vcombine.high %v476_v1, %v476_v1  ;;  %v614_v60 = vrot.slane %v585_v52, %v892_v46  ;;  %v599_v61 = vrot.slane %v577_v53, %v884_v38  ;;  %v607_v62 = vcombine.high %v585_v52, %v585_v52 }
  0x76   :  { %v553_v63 = vsel %vm460_vm0, %v516_v55, %v886_v44  ;;  %v520_v2 = vrot.slane %v499_v56, %v892_v46  ;;  %v524_v3 = vrot.slane %v507_v57, %v892_v46  ;;  %v509_v4 = vcombine.high %v499_v56, %v499_v56 }
  0x77   :  { %659 = vst [vmem:[#allocation5] sm:$0xff] %v553_v63  ;;  %v532_v5 = vrot.slane %v492_v58, %v892_v46  ;;  %v506_v7 = vrot.slane %v478_v59, %v884_v38  ;;  %v508_v8 = vcombine.high %v492_v58, %v492_v58  ;;  %v651_v10 = vsel %vm460_vm0, %v614_v60, %v894_v47 }
  0x78   :  { %v554_v11 = vsel %vm460_vm0, %v520_v2, %v886_v44  ;;  %v555_v12 = vsel %vm460_vm0, %v524_v3, %v886_v44  ;;  %v528_v13 = vrot.slane %v509_v4, %v892_v46  ;;  %667 = vst [vmem:[#allocation6] sm:$0xff] %v651_v10  ;;  %v618_v14 = vrot.slane %v599_v61, %v892_v46 }
  0x79   :  { %660 = vst [vmem:[#allocation5 + $0x8] sm:$0xff] %v554_v11  ;;  %661 = vst [vmem:[#allocation5 + $0x10] sm:$0xff] %v555_v12  ;;  %v557_v15 = vsel %vm460_vm0, %v532_v5, %v886_v44  ;;  %v536_v16 = vrot.slane %v506_v7, %v892_v46  ;;  %v540_v17 = vrot.slane %v508_v8, %v892_v46 }
  0x7a   :  { %v510_v18 = vcombine.high %v506_v7, %v506_v7  ;;  %v556_v19 = vsel %vm460_vm0, %v528_v13, %v886_v44  ;;  %663 = vst [vmem:[#allocation5 + $0x20] sm:$0xff] %v557_v15  ;;  %v652_v20 = vsel %vm460_vm0, %v618_v14, %v894_v47  ;;  %v622_v21 = vrot.slane %v607_v62, %v892_v46 }
  0x7b   :  { %v609_v22 = vcombine.high %v599_v61, %v599_v61  ;;  %662 = vst [vmem:[#allocation5 + $0x18] sm:$0xff] %v556_v19  ;;  %v558_v23 = vsel %vm460_vm0, %v536_v16, %v886_v44  ;;  %v559_v24 = vsel %vm460_vm0, %v540_v17, %v886_v44  ;;  %668 = vst [vmem:[#allocation6 + $0x8] sm:$0xff] %v652_v20 }
  0x7c   :  { %v544_v25 = vrot.slane %v510_v18, %v892_v46  ;;  %v592_v26 = vrot.slane %v576_v54, %v884_v38  ;;  %664 = vst [vmem:[#allocation5 + $0x28] sm:$0xff] %v558_v23  ;;  %665 = vst [vmem:[#allocation5 + $0x30] sm:$0xff] %v559_v24  ;;  %v653_v27 = vsel %vm460_vm0, %v622_v21, %v894_v47 }
  0x7d   :  { %v626_v28 = vrot.slane %v609_v22, %v892_v46  ;;  %v578_v29 = vcombine.high %v576_v54, %v576_v54  ;;  %669 = vst [vmem:[#allocation6 + $0x10] sm:$0xff] %v653_v27 }
  0x7e   :  { %v560_v30 = vsel %vm460_vm0, %v544_v25, %v886_v44  ;;  %v630_v31 = vrot.slane %v592_v26, %v892_v46  ;;  %v608_v32 = vcombine.high %v592_v26, %v592_v26 }
  0x7f   :  { %666 = vst [vmem:[#allocation5 + $0x38] sm:$0xff] %v560_v30  ;;  %v654_v33 = vsel %vm460_vm0, %v626_v28, %v894_v47  ;;  %v606_v34 = vrot.slane %v578_v29, %v884_v38 }
  0x80   :  { %670 = vst [vmem:[#allocation6 + $0x18] sm:$0xff] %v654_v33  ;;  %v655_v35 = vsel %vm460_vm0, %v630_v31, %v894_v47  ;;  %v638_v9 = vrot.slane %v608_v32, %v892_v46 }
  0x81   :  { %780 = shalt.err (!%p777_p12)
}
  0x82   :  { %s781_s26 = scalar_lea.hbm %s1010_s1, 1024 }
  0x83   :  { %p782_p13 = scmp.ne.s32.totalorder %s1010_s1, %s781_s26  ;;  %p785_p0 = scmp.lt.u32.totalorder %s781_s26, %s1010_s1 }
  0x85   :  { %p787_p1 = pnand %p785_p0, %p782_p13 }
  0x87   :  { %790 = shalt.err (!%p787_p1)
}
  0x88   :  { %s828_s3 = smov 128   ;;  %s829_s4 = smov 8   ;;  %671 = vst [vmem:[#allocation6 + $0x20] sm:$0xff] %v655_v35  ;;  %v634_v36 = vrot.slane %v606_v34, %v892_v46  ;;  %v610_v37 = vcombine.high %v606_v34, %v606_v34  ;;  %v657_v38 = vsel %vm460_vm0, %v638_v9, %v894_v47 }
  0x89   :  { %686 = dma.vmem_to_hbm [thread:$0]  %s681_s22, 1024, %s1010_s1, [#allocation4], %s828_s3, %s828_s3, %s829_s4   ;;  %673 = vst [vmem:[#allocation6 + $0x30] sm:$0xff] %v657_v38 }
  0x8a   :  { %s830_s7 = smov [#allocation6]   ;;  %v656_v39 = vsel %vm460_vm0, %v634_v36, %v894_v47  ;;  %v642_v40 = vrot.slane %v610_v37, %v892_v46 }
  0x8b   :  { %s692_s8 = sshll.u32 %s830_s7, 4  ;;  %672 = vst [vmem:[#allocation6 + $0x28] sm:$0xff] %v656_v39  ;;  %s693_s8 = int_to_ptr.vmem [resolvable:$true] %s692_s8 }
  0x8c   :  { %v658_v41 = vsel %vm460_vm0, %v642_v40, %v894_v47  ;;  %s791_s1 = scalar_lea.vmem %s693_s8, 1024  ;;  %p796_p3 = scmp.lt.s32.totalorder %s693_s8, %s693_s8 }
  0x8d   :  { %674 = vst [vmem:[#allocation6 + $0x38] sm:$0xff] %v658_v41  ;;  %p792_p2 = scmp.ne.s32.totalorder %s693_s8, %s791_s1  ;;  %p797_p4 = scmp.lt.s32.totalorder %s791_s1, %s791_s1 }
  0x8f   :  { %p798_p5 = por %p797_p4, %p796_p3 }
  0x91   :  { %p799_p6 = pnand %p798_p5, %p792_p2 }
  0x93   :  { %802 = shalt.err (!%p799_p6)
}
  0x94   :  { %s803_s11 = scalar_lea.hbm %s1011_s2, 1024 }
  0x95   :  { %p804_p7 = scmp.ne.s32.totalorder %s1011_s2, %s803_s11  ;;  %p807_p8 = scmp.lt.u32.totalorder %s803_s11, %s1011_s2 }
  0x97   :  { %p809_p9 = pnand %p807_p8, %p804_p7 }
  0x99   :  { %812 = shalt.err (!%p809_p9)
}
  0x9a   :  { %698 = dma.vmem_to_hbm [thread:$0]  %s693_s8, 1024, %s1011_s2, [#allocation7], %s828_s3, %s828_s3, %s829_s4  }
  0x9b   :  { %815 = dma.done.wait [#allocation4], 1024  }
  0x9c   :  { %816 = vsyncadd [#allocation4], 4294966272 }
  0x9d   :  { %817 = dma.done.wait [#allocation7], 1024  }
  0x9e   :  { %818 = vsyncadd [#allocation7], 4294966272 }
  0x9f   :  { %705 = vsyncpa [#allocation3], 1 }
  0xa0   :  { %706 = vsyncpa [#allocation4], 1 }
  0xa1   :  { %707 = vsyncpa [#allocation7], 1 }

</bundles_post_ra>
